<compile_context>
chip_gen: v7x
topology: tpu7x:2x2x1
jax: 0.10.0
libtpu: 0.0.40
codegen_flags: <defaults>
</compile_context>

<pallas_src>
import functools

import jax
import jax.numpy as jnp
from jax import lax
from jax.experimental import pallas as pl
from jax.experimental.pallas import tpu as pltpu

LANE = 128
SUBLANE = 8


def _dice_partial_kernel(pr_ref, gt_ref, out_ref, acc_tg, acc_t, acc_g, *,
                         valid_rows, block_rows, acc_rows, nb_full, nb_total,
                         per_split):
    s = pl.program_id(0)          # TensorCore split (CORE_PARALLEL when >1)
    j = pl.program_id(1)          # sequential blocks within a split
    lb = s * per_split + j        # logical block index over the (rows, 128) slab

    @pl.when(j == 0)
    def _init():
        acc_tg[...] = jnp.zeros_like(acc_tg)
        acc_t[...] = jnp.zeros_like(acc_t)
        acc_g[...] = jnp.zeros_like(acc_g)

    groups = block_rows // acc_rows   # independent reduction chains per vreg row-group

    def accumulate(masked):
        x = pr_ref[...].astype(jnp.float32)
        g = gt_ref[...].astype(jnp.float32)
        # sigmoid(x) = 0.5*tanh(0.5*x) + 0.5; the affine part is applied once in
        # the wrapper epilogue, so steady state is one EUP op + a few VPU adds.
        t = jnp.tanh(0.5 * x)
        if masked:
            # Row-level mask only (last/overflow blocks); jnp.where kills any
            # NaN/garbage coming from Pallas block padding.
            row = lax.broadcasted_iota(jnp.int32, (block_rows, LANE), 0)
            keep = (lb * block_rows + row) < valid_rows
            t = jnp.where(keep, t, 0.0)
            g = jnp.where(keep, g, 0.0)
        # (groups, acc_rows, 128): leading-axis sums are pure VPU adds (no XLU),
        # and acc_rows/8 result vregs keep multiple independent add chains alive.
        acc_tg[...] += jnp.sum((t * g).reshape(groups, acc_rows, LANE), axis=0)
        acc_t[...] += jnp.sum(t.reshape(groups, acc_rows, LANE), axis=0)
        acc_g[...] += jnp.sum(g.reshape(groups, acc_rows, LANE), axis=0)

    if nb_full >= nb_total:
        # Every block fully valid: no masking anywhere (common big-tensor case).
        accumulate(False)
    elif nb_full == 0:
        accumulate(True)
    else:
        pl.when(lb < nb_full)(lambda: accumulate(False))
        pl.when(lb >= nb_full)(lambda: accumulate(True))

    @pl.when(j == per_split - 1)
    def _store():
        out_ref[0, 0] = acc_tg[...]
        out_ref[0, 1] = acc_t[...]
        out_ref[0, 2] = acc_g[...]


def _finalize(inter, s_p, s_g, eps, beta2):
    fp = s_p - inter
    fn = s_g - inter
    numerator = (1.0 + beta2) * inter + eps
    denominator = (1.0 + beta2) * inter + beta2 * fn + fp + eps
    return 1.0 - numerator / denominator


def dice_loss_c(y_pr, y_gt, *, eps=1e-6, beta=1.0, block_rows=8192, n_splits=1,
                vmem_limit_bytes=None):
    """Pallas TPU implementation of DiceLossC.forward (activation='sigmoid').

    y_gt may be f32 / bf16 / int8 / bool (cast happens per tile in-kernel).
    On v7x pass n_splits=2 to shard the reduction across both TensorCores
    (CORE_PARALLEL); leave n_splits=1 on single-TC v5e/v6e.

    # TODO(synk): activation='softmax' and ignore_channels are not implemented
    # (module defaults: sigmoid activation, ignore_channels=None).
    """
    n = int(y_pr.size)
    beta2 = float(beta) * float(beta)
    eps = float(eps)

    pr = y_pr.reshape(-1)
    gt = y_gt.reshape(-1)

    valid_rows = n // LANE
    if valid_rows < SUBLANE:
        # Tiny input (< 1024 elems): a kernel launch is pure overhead.
        p = jax.nn.sigmoid(pr.astype(jnp.float32))
        g = gt.astype(jnp.float32)
        return _finalize(jnp.sum(p * g), jnp.sum(p), jnp.sum(g), eps, beta2)

    n_main = valid_rows * LANE
    if n_main != n:
        # Sub-128-element tail handled in the epilogue; no jnp.pad of the
        # full tensors.
        pr_main, gt_main = pr[:n_main], gt[:n_main]
    else:
        pr_main, gt_main = pr, gt
    pr2 = pr_main.reshape(valid_rows, LANE)
    gt2 = gt_main.reshape(valid_rows, LANE)

    # Block rows: multiple of 8, never larger than the row count.
    br = max(SUBLANE, (int(block_rows) // SUBLANE) * SUBLANE)
    br = min(br, (valid_rows // SUBLANE) * SUBLANE)
    # Accumulator height: 32/16/8 rows -> 4/2/1 independent add chains.
    acc_rows = 32 if br % 32 == 0 else (16 if br % 16 == 0 else SUBLANE)

    nb = pl.cdiv(valid_rows, br)            # blocks containing data
    n_splits = min(max(1, int(n_splits)), nb)
    per_split = pl.cdiv(nb, n_splits)       # blocks per TensorCore split
    nb_total = n_splits * per_split         # grid steps incl. overflow
    nb_full = valid_rows // br              # blocks with no ragged tail

    # Explicit scoped-VMEM budget so large double-buffered tiles compile on
    # every generation (v5e default scoped limit is only 16 MiB).
    if vmem_limit_bytes is None:
        in_bytes = br * LANE * (pr2.dtype.itemsize + gt2.dtype.itemsize) * 2
        misc = 9 * acc_rows * LANE * 4 + (1 << 20)
        vmem_limit_bytes = min(max(int(1.25 * in_bytes) + misc, 32 << 20), 128 << 20)

    kernel = functools.partial(
        _dice_partial_kernel,
        valid_rows=valid_rows, block_rows=br, acc_rows=acc_rows,
        nb_full=nb_full, nb_total=nb_total, per_split=per_split)

    # Clamp overflow steps onto the last real block; they are fully masked.
    def in_map(s, j):
        return (jnp.minimum(s * per_split + j, nb - 1), 0)

    lead_sem = pltpu.CORE_PARALLEL if n_splits > 1 else "arbitrary"

    partials = pl.pallas_call(
        kernel,
        out_shape=jax.ShapeDtypeStruct((n_splits, 3, acc_rows, LANE), jnp.float32),
        grid_spec=pltpu.PrefetchScalarGridSpec(
            num_scalar_prefetch=0,
            grid=(n_splits, per_split),
            in_specs=[
                pl.BlockSpec((br, LANE), in_map),
                pl.BlockSpec((br, LANE), in_map),
            ],
            out_specs=pl.BlockSpec((1, 3, acc_rows, LANE),
                                   lambda s, j: (s, 0, 0, 0)),
            scratch_shapes=[
                pltpu.VMEM((acc_rows, LANE), jnp.float32),
                pltpu.VMEM((acc_rows, LANE), jnp.float32),
                pltpu.VMEM((acc_rows, LANE), jnp.float32),
            ],
        ),
        compiler_params=pltpu.CompilerParams(
            dimension_semantics=(lead_sem, "arbitrary"),
            vmem_limit_bytes=int(vmem_limit_bytes),
        ),
    )(pr2, gt2)

    # Tiny epilogue: combine per-split vreg partials, undo the sigmoid affine,
    # fold in the sub-128 tail, apply the dice formula.
    sums = jnp.sum(partials, axis=(0, 2, 3))     # [sum(t*g), sum(t), sum(g)]
    s_tg, s_t, s_g = sums[0], sums[1], sums[2]
    inter = 0.5 * s_g + 0.5 * s_tg               # sum(p*g), p = 0.5*t + 0.5
    s_p = 0.5 * float(n_main) + 0.5 * s_t        # sum(p) over kernel-covered elems

    if n_main != n:
        p_t = jax.nn.sigmoid(pr[n_main:].astype(jnp.float32))
        g_t = gt[n_main:].astype(jnp.float32)
        inter = inter + jnp.sum(p_t * g_t)
        s_p = s_p + jnp.sum(p_t)
        s_g = s_g + jnp.sum(g_t)

    return _finalize(inter, s_p, s_g, eps, beta2)


def _dice_loss_ref(y_pr, y_gt, eps=1e-6, beta=1.0):
    p = jax.nn.sigmoid(y_pr.reshape(-1).astype(jnp.float32))
    g = y_gt.reshape(-1).astype(jnp.float32)
    inter = jnp.sum(p * g)
    fp = jnp.sum(p * (1.0 - g))
    fn = jnp.sum((1.0 - p) * g)
    num = (1.0 + beta ** 2) * inter + eps
    den = (1.0 + beta ** 2) * inter + beta ** 2 * fn + fp + eps
    return 1.0 - num / den


if __name__ == "__main__":
    key = jax.random.PRNGKey(0)
    k1, k2 = jax.random.split(key)
    # NCHW-shaped inputs, as in the PyTorch module's typical segmentation usage.
    y_pr = jax.random.normal(k1, (2, 4, 16, 16), dtype=jnp.float32)   # logits
    y_gt = (jax.random.uniform(k2, (2, 4, 16, 16)) > 0.5).astype(jnp.float32)

    loss = jax.block_until_ready(dice_loss_c(y_pr, y_gt))
    ref = jax.block_until_ready(_dice_loss_ref(y_pr, y_gt))
    assert jnp.allclose(loss, ref, atol=1e-5, rtol=1e-5), (loss, ref)

    print("KERNEL_OK")
</pallas_src>

<mosaic_0001>
module attributes {stable_mosaic.version = 11 : i64} {
  func.func @_dice_partial_kernel(%arg0: i32, %arg1: i32, %arg2: memref<16x128xf32, #tpu.memory_space<vmem>>, %arg3: memref<16x128xf32, #tpu.memory_space<vmem>>, %arg4: memref<1x3x16x128xf32, #tpu.memory_space<vmem>>, %arg5: memref<16x128xf32, #tpu.memory_space<vmem>>, %arg6: memref<16x128xf32, #tpu.memory_space<vmem>>, %arg7: memref<16x128xf32, #tpu.memory_space<vmem>>) attributes {dimension_semantics = [#tpu.dimension_semantics<arbitrary>, #tpu.dimension_semantics<arbitrary>], iteration_bounds = array<i64: 1, 1>, scalar_prefetch = 0 : i64, scratch_operands = 3 : i64, tpu.core_type = #tpu.core_type<tc>, window_params = [{transform_indices = @transform_0, window_bounds = array<i64: 16, 128>}, {transform_indices = @transform_1, window_bounds = array<i64: 16, 128>}, {transform_indices = @transform_2, window_bounds = array<i64: 1, 3, 16, 128>}]} {
    %c0_i32 = arith.constant 0 : i32
    %0 = arith.cmpi eq, %arg1, %c0_i32 : i32
    %1 = arith.extui %0 : i1 to i32
    %c0_i32_0 = arith.constant 0 : i32
    %2 = arith.cmpi ne, %1, %c0_i32_0 : i32
    scf.if %2 {
      %cst_21 = arith.constant 0.000000e+00 : f32
      %27 = vector.broadcast %cst_21 : f32 to vector<16x128xf32>
      %c0_22 = arith.constant 0 : index
      %c0_23 = arith.constant 0 : index
      %28 = vector.load %arg5[%c0_22, %c0_23] : memref<16x128xf32, #tpu.memory_space<vmem>>, vector<16x128xf32>
      tpu.vector_store %arg5[%c0_22, %c0_23], %27 {strides = array<i32>} : memref<16x128xf32, #tpu.memory_space<vmem>>, vector<16x128xf32>,
      %cst_24 = arith.constant 0.000000e+00 : f32
      %29 = vector.broadcast %cst_24 : f32 to vector<16x128xf32>
      %c0_25 = arith.constant 0 : index
      %c0_26 = arith.constant 0 : index
      %30 = vector.load %arg6[%c0_25, %c0_26] : memref<16x128xf32, #tpu.memory_space<vmem>>, vector<16x128xf32>
      tpu.vector_store %arg6[%c0_25, %c0_26], %29 {strides = array<i32>} : memref<16x128xf32, #tpu.memory_space<vmem>>, vector<16x128xf32>,
      %cst_27 = arith.constant 0.000000e+00 : f32
      %31 = vector.broadcast %cst_27 : f32 to vector<16x128xf32>
      %c0_28 = arith.constant 0 : index
      %c0_29 = arith.constant 0 : index
      %32 = vector.load %arg7[%c0_28, %c0_29] : memref<16x128xf32, #tpu.memory_space<vmem>>, vector<16x128xf32>
      tpu.vector_store %arg7[%c0_28, %c0_29], %31 {strides = array<i32>} : memref<16x128xf32, #tpu.memory_space<vmem>>, vector<16x128xf32>,
    } else {
    }
    %c0 = arith.constant 0 : index
    %c0_1 = arith.constant 0 : index
    %3 = vector.load %arg2[%c0, %c0_1] : memref<16x128xf32, #tpu.memory_space<vmem>>, vector<16x128xf32>
    %c0_2 = arith.constant 0 : index
    %c0_3 = arith.constant 0 : index
    %4 = vector.load %arg3[%c0_2, %c0_3] : memref<16x128xf32, #tpu.memory_space<vmem>>, vector<16x128xf32>
    %cst = arith.constant 5.000000e-01 : f32
    %5 = vector.broadcast %cst : f32 to vector<16x128xf32>
    %6 = arith.mulf %5, %3 : vector<16x128xf32>
    %7 = math.tanh %6 : vector<16x128xf32>
    %c0_4 = arith.constant 0 : index
    %c0_5 = arith.constant 0 : index
    %8 = vector.load %arg5[%c0_4, %c0_5] : memref<16x128xf32, #tpu.memory_space<vmem>>, vector<16x128xf32>
    %9 = arith.mulf %7, %4 : vector<16x128xf32>
    %10 = vector.shape_cast %9 : vector<16x128xf32> to vector<1x16x128xf32>
    %cst_6 = arith.constant dense<0.000000e+00> : vector<16x128xf32>
    %11 = vector.multi_reduction <add>, %10, %cst_6 [0] : vector<1x16x128xf32> to vector<16x128xf32>
    %12 = arith.addf %8, %11 : vector<16x128xf32>
    %c0_7 = arith.constant 0 : index
    %c0_8 = arith.constant 0 : index
    %13 = vector.load %arg5[%c0_7, %c0_8] : memref<16x128xf32, #tpu.memory_space<vmem>>, vector<16x128xf32>
    tpu.vector_store %arg5[%c0_7, %c0_8], %12 {strides = array<i32>} : memref<16x128xf32, #tpu.memory_space<vmem>>, vector<16x128xf32>,
    %c0_9 = arith.constant 0 : index
    %c0_10 = arith.constant 0 : index
    %14 = vector.load %arg6[%c0_9, %c0_10] : memref<16x128xf32, #tpu.memory_space<vmem>>, vector<16x128xf32>
    %15 = vector.shape_cast %7 : vector<16x128xf32> to vector<1x16x128xf32>
    %cst_11 = arith.constant dense<0.000000e+00> : vector<16x128xf32>
    %16 = vector.multi_reduction <add>, %15, %cst_11 [0] : vector<1x16x128xf32> to vector<16x128xf32>
    %17 = arith.addf %14, %16 : vector<16x128xf32>
    %c0_12 = arith.constant 0 : index
    %c0_13 = arith.constant 0 : index
    %18 = vector.load %arg6[%c0_12, %c0_13] : memref<16x128xf32, #tpu.memory_space<vmem>>, vector<16x128xf32>
    tpu.vector_store %arg6[%c0_12, %c0_13], %17 {strides = array<i32>} : memref<16x128xf32, #tpu.memory_space<vmem>>, vector<16x128xf32>,
    %c0_14 = arith.constant 0 : index
    %c0_15 = arith.constant 0 : index
    %19 = vector.load %arg7[%c0_14, %c0_15] : memref<16x128xf32, #tpu.memory_space<vmem>>, vector<16x128xf32>
    %20 = vector.shape_cast %4 : vector<16x128xf32> to vector<1x16x128xf32>
    %cst_16 = arith.constant dense<0.000000e+00> : vector<16x128xf32>
    %21 = vector.multi_reduction <add>, %20, %cst_16 [0] : vector<1x16x128xf32> to vector<16x128xf32>
    %22 = arith.addf %19, %21 : vector<16x128xf32>
    %c0_17 = arith.constant 0 : index
    %c0_18 = arith.constant 0 : index
    %23 = vector.load %arg7[%c0_17, %c0_18] : memref<16x128xf32, #tpu.memory_space<vmem>>, vector<16x128xf32>
    tpu.vector_store %arg7[%c0_17, %c0_18], %22 {strides = array<i32>} : memref<16x128xf32, #tpu.memory_space<vmem>>, vector<16x128xf32>,
    %c0_i32_19 = arith.constant 0 : i32
    %24 = arith.cmpi eq, %arg1, %c0_i32_19 : i32
    %25 = arith.extui %24 : i1 to i32
    %c0_i32_20 = arith.constant 0 : i32
    %26 = arith.cmpi ne, %25, %c0_i32_20 : i32
    scf.if %26 {
      %c0_21 = arith.constant 0 : index
      %c0_22 = arith.constant 0 : index
      %27 = vector.load %arg5[%c0_21, %c0_22] : memref<16x128xf32, #tpu.memory_space<vmem>>, vector<16x128xf32>
      %c0_23 = arith.constant 0 : index
      %c0_24 = arith.constant 0 : index
      %c0_25 = arith.constant 0 : index
      %c0_26 = arith.constant 0 : index
      %28 = vector.load %arg4[%c0_23, %c0_24, %c0_25, %c0_26] : memref<1x3x16x128xf32, #tpu.memory_space<vmem>>, vector<1x1x16x128xf32>
      %29 = vector.shape_cast %28 : vector<1x1x16x128xf32> to vector<16x128xf32>
      %30 = vector.shape_cast %27 : vector<16x128xf32> to vector<1x1x16x128xf32>
      tpu.vector_store %arg4[%c0_23, %c0_24, %c0_25, %c0_26], %30 {strides = array<i32>} : memref<1x3x16x128xf32, #tpu.memory_space<vmem>>, vector<1x1x16x128xf32>,
      %c0_27 = arith.constant 0 : index
      %c0_28 = arith.constant 0 : index
      %31 = vector.load %arg6[%c0_27, %c0_28] : memref<16x128xf32, #tpu.memory_space<vmem>>, vector<16x128xf32>
      %c0_29 = arith.constant 0 : index
      %c1 = arith.constant 1 : index
      %c0_30 = arith.constant 0 : index
      %c0_31 = arith.constant 0 : index
      %32 = vector.load %arg4[%c0_29, %c1, %c0_30, %c0_31] : memref<1x3x16x128xf32, #tpu.memory_space<vmem>>, vector<1x1x16x128xf32>
      %33 = vector.shape_cast %32 : vector<1x1x16x128xf32> to vector<16x128xf32>
      %34 = vector.shape_cast %31 : vector<16x128xf32> to vector<1x1x16x128xf32>
      tpu.vector_store %arg4[%c0_29, %c1, %c0_30, %c0_31], %34 {strides = array<i32>} : memref<1x3x16x128xf32, #tpu.memory_space<vmem>>, vector<1x1x16x128xf32>,
      %c0_32 = arith.constant 0 : index
      %c0_33 = arith.constant 0 : index
      %35 = vector.load %arg7[%c0_32, %c0_33] : memref<16x128xf32, #tpu.memory_space<vmem>>, vector<16x128xf32>
      %c0_34 = arith.constant 0 : index
      %c2 = arith.constant 2 : index
      %c0_35 = arith.constant 0 : index
      %c0_36 = arith.constant 0 : index
      %36 = vector.load %arg4[%c0_34, %c2, %c0_35, %c0_36] : memref<1x3x16x128xf32, #tpu.memory_space<vmem>>, vector<1x1x16x128xf32>
      %37 = vector.shape_cast %36 : vector<1x1x16x128xf32> to vector<16x128xf32>
      %38 = vector.shape_cast %35 : vector<16x128xf32> to vector<1x1x16x128xf32>
      tpu.vector_store %arg4[%c0_34, %c2, %c0_35, %c0_36], %38 {strides = array<i32>} : memref<1x3x16x128xf32, #tpu.memory_space<vmem>>, vector<1x1x16x128xf32>,
    } else {
    }
    return
  }
  func.func @transform_0(%arg0: i32, %arg1: i32) -> (i32, i32) {
    %c1_i32 = arith.constant 1 : i32
    %0 = arith.muli %arg0, %c1_i32 : i32
    %1 = arith.addi %0, %arg1 : i32
    %c0_i32 = arith.constant 0 : i32
    %2 = arith.minsi %1, %c0_i32 : i32
    %c0_i32_0 = arith.constant 0 : i32
    %c0_i32_1 = arith.constant 0 : i32
    return %2, %c0_i32_0 : i32, i32
  }
  func.func @transform_1(%arg0: i32, %arg1: i32) -> (i32, i32) {
    %c1_i32 = arith.constant 1 : i32
    %0 = arith.muli %arg0, %c1_i32 : i32
    %1 = arith.addi %0, %arg1 : i32
    %c0_i32 = arith.constant 0 : i32
    %2 = arith.minsi %1, %c0_i32 : i32
    %c0_i32_0 = arith.constant 0 : i32
    %c0_i32_1 = arith.constant 0 : i32
    return %2, %c0_i32_0 : i32, i32
  }
  func.func @transform_2(%arg0: i32, %arg1: i32) -> (i32, i32, i32, i32) {
    %c0_i32 = arith.constant 0 : i32
    %c0_i32_0 = arith.constant 0 : i32
    %c0_i32_1 = arith.constant 0 : i32
    %c0_i32_2 = arith.constant 0 : i32
    return %arg0, %c0_i32, %c0_i32_0, %c0_i32_1 : i32, i32, i32, i32
  }
}

</mosaic_0001>

<bundles_post_ra>
// kernel: tpu_custom_call.1
= control target key start
LH: loop header
LB: loop body
LE: loop exit
PB: predicated region body
PF: predicated region fallthrough
CT: control target
= control target key end

     0   :  { %7 = vsyncpa [#allocation6], 0  ;;  %s289_s0 = inlined_call_operand.hbm [shape: f32[16,128], index: 0, kind: input, shape index: {}]   ;;  %s290_s1 = inlined_call_operand.hbm [shape: f32[16,128], index: 1, kind: input, shape index: {}]   ;;  %s291_s2 = inlined_call_operand.hbm [shape: f32[1,3,16,128], index: 2, kind: output, shape index: {}]  }
   0x1   :  { %8 = vsyncpa [#allocation9], 0 }
   0x2   :  { %9 = vsyncpa [#allocation7], 0  ;;  %s224_s9 = smov [#allocation5]   ;;  %s152_s13 = scalar_lea.hbm %s289_s0, 256 }
   0x3   :  { %s21_s10 = sshll.u32 %s224_s9, 4  ;;  %p153_p0 = scmp.ne.s32.totalorder %s289_s0, %s152_s13  ;;  %s22_s10 = int_to_ptr.vmem [resolvable:$true] %s21_s10 }
   0x4   :  { %p156_p1 = scmp.lt.u32.totalorder %s152_s13, %s289_s0 }
   0x6   :  { %p158_p2 = pnand %p156_p1, %p153_p0 }
   0x8   :  { %161 = shalt.err (!%p158_p2)
}
   0x9   :  { %s162_s18 = scalar_lea.vmem %s22_s10, 256  ;;  %p167_p4 = scmp.lt.s32.totalorder %s22_s10, %s22_s10 }
   0xa   :  { %p163_p3 = scmp.ne.s32.totalorder %s22_s10, %s162_s18  ;;  %p168_p5 = scmp.lt.s32.totalorder %s162_s18, %s162_s18 }
   0xc   :  { %p169_p6 = por %p168_p5, %p167_p4 }
   0xe   :  { %p170_p7 = pnand %p169_p6, %p163_p3 }
  0x10   :  { %173 = shalt.err (!%p170_p7)
}
  0x11   :  { %s225_s19 = smov 128   ;;  %s226_s20 = smov 8  }
  0x12   :  { %27 = dma.hbm_to_vmem [thread:$0]  %s289_s0, 256, %s22_s10, [#allocation6], %s225_s19, %s225_s19, %s226_s20  }
  0x13   :  { %s227_s23 = smov [#allocation8]   ;;  %s174_s27 = scalar_lea.hbm %s290_s1, 256 }
  0x14   :  { %s39_s24 = sshll.u32 %s227_s23, 4  ;;  %p175_p8 = scmp.ne.s32.totalorder %s290_s1, %s174_s27  ;;  %s40_s24 = int_to_ptr.vmem [resolvable:$true] %s39_s24 }
  0x15   :  { %p178_p9 = scmp.lt.u32.totalorder %s174_s27, %s290_s1 }
  0x17   :  { %p180_p10 = pnand %p178_p9, %p175_p8 }
  0x19   :  { %183 = shalt.err (!%p180_p10)
}
  0x1a   :  { %s184_s4 = scalar_lea.vmem %s40_s24, 256  ;;  %p189_p12 = scmp.lt.s32.totalorder %s40_s24, %s40_s24 }
  0x1b   :  { %p185_p11 = scmp.ne.s32.totalorder %s40_s24, %s184_s4  ;;  %p190_p13 = scmp.lt.s32.totalorder %s184_s4, %s184_s4 }
  0x1d   :  { %p191_p0 = por %p190_p13, %p189_p12 }
  0x1f   :  { %p192_p1 = pnand %p191_p0, %p185_p11 }
  0x21   :  { %195 = shalt.err (!%p192_p1)
}
  0x22   :  { %45 = dma.hbm_to_vmem [thread:$0]  %s290_s1, 256, %s40_s24, [#allocation9], %s225_s19, %s225_s19, %s226_s20  }
  0x23   :  { %218 = dma.done.wait [#allocation6], 256  }
  0x24   :  { %219 = vsyncadd [#allocation6], 4294967040 }
  0x25   :  { %220 = dma.done.wait [#allocation9], 256  }
  0x26   :  { %221 = vsyncadd [#allocation9], 4294967040  ;;  %v70_v0 = vld [vmem:[#allocation5] sm:$0xff]  ;;  %v72_v1 = vld [vmem:[#allocation8] sm:$0xff]  ;;  %s228_s6 = smov [#allocation10]  }
  0x27   :  { %v71_v2 = vld [vmem:[#allocation5 + $0x8] sm:$0xff]  ;;  %v74_v3 = vmul.f32 0.5, %v70_v0  ;;  %119 = vst [vmem:[#allocation10 + $0x20] sm:$0xff] %v72_v1  ;;  %v73_v4 = vld [vmem:[#allocation8 + $0x8] sm:$0xff]  ;;  %s126_s7 = sshll.u32 %s228_s6, 4  ;;  %s127_s7 = int_to_ptr.vmem [resolvable:$true] %s126_s7 }
  0x28   :  { %v75_v5 = vmul.f32 0.5, %v71_v2  ;;  %120 = vst [vmem:[#allocation10 + $0x28] sm:$0xff] %v73_v4  ;;  %s196_s1 = scalar_lea.vmem %s127_s7, 768  ;;  %p201_p3 = scmp.lt.s32.totalorder %s127_s7, %s127_s7 }
  0x29   :  { %148 = vtanh.f32 %v74_v3  ;;  %p197_p2 = scmp.ne.s32.totalorder %s127_s7, %s196_s1  ;;  %p202_p4 = scmp.lt.s32.totalorder %s196_s1, %s196_s1 }
  0x2a   :  { %150 = vtanh.f32 %v75_v5 }
  0x2b   :  { %p203_p5 = por %p202_p4, %p201_p3 }
  0x2d   :  { %p204_p6 = pnand %p203_p5, %p197_p2 }
  0x33   :  { %v149_v6 = vpop.eup %148 }
  0x34   :  { %v151_v7 = vpop.eup %150  ;;  %v80_v8 = vmul.f32 %v149_v6, %v72_v1  ;;  %114 = vst [vmem:[#allocation10 + $0x10] sm:$0xff] %v149_v6 }
  0x35   :  { %v81_v9 = vmul.f32 %v151_v7, %v73_v4  ;;  %115 = vst [vmem:[#allocation10 + $0x18] sm:$0xff] %v151_v7 }
  0x36   :  { %109 = vst [vmem:[#allocation10] sm:$0xff] %v80_v8 }
  0x37   :  { %110 = vst [vmem:[#allocation10 + $0x8] sm:$0xff] %v81_v9 }
  0x38   :  { %207 = shalt.err (!%p204_p6)
}
  0x39   :  { %s208_s10 = scalar_lea.hbm %s291_s2, 768 }
  0x3a   :  { %p209_p7 = scmp.ne.s32.totalorder %s291_s2, %s208_s10  ;;  %p212_p8 = scmp.lt.u32.totalorder %s208_s10, %s291_s2 }
  0x3c   :  { %p214_p9 = pnand %p212_p8, %p209_p7 }
  0x3e   :  { %217 = shalt.err (!%p214_p9)
}
  0x3f   :  { %132 = dma.vmem_to_hbm [thread:$0]  %s127_s7, 768, %s291_s2, [#allocation7], %s225_s19, %s225_s19, %s226_s20  }
  0x40   :  { %222 = dma.done.wait [#allocation7], 768  }
  0x41   :  { %223 = vsyncadd [#allocation7], 4294966528 }
  0x42   :  { %136 = vsyncpa [#allocation6], 1 }
  0x43   :  { %137 = vsyncpa [#allocation9], 1 }
  0x44   :  { %138 = vsyncpa [#allocation7], 1 }

</bundles_post_ra>
